<compile_context>
chip_gen: v5e
topology: v5e:2x2
jax: 0.10.0
libtpu: 0.0.40
codegen_flags: <defaults>
</compile_context>

<pallas_src>
import math
from typing import NamedTuple

import jax
import jax.numpy as jnp
from jax import lax
from jax.experimental import pallas as pl
from jax.experimental.pallas import tpu as pltpu


_LANE = 128
_SUBLANE = 8
_INV_SQRT2 = 1.0 / math.sqrt(2.0)


def _round_up(x, m):
    return (x + m - 1) // m * m


def _vmem_budget():
    """(budget_bytes, physical_cap_bytes), generation-aware with safe fallback."""
    cap = 64 * 1024 * 1024  # conservative default: v7x per-TC VMEM
    try:
        info = pltpu.get_tpu_info()
        c = getattr(info, "vmem_capacity_bytes", None)
        if c:
            cap = int(c)
    except Exception:
        pass
    return cap * 3 // 4, cap


def _per_row_bytes(kp, tn, x_bytes, out_bytes):
    # double-buffered x / out row-tiles + f32 intermediates (h, h1/h2, g, g*h2)
    return 2 * kp * x_bytes + 2 * tn * out_bytes + 6 * tn * 4


def _weight_bytes(kp, tn, w_bytes, nbuf):
    return nbuf * (kp * 2 * tn * w_bytes + 2 * tn * 4)


def _choose_tn(kp, out_dim, x_bytes, w_bytes, out_bytes, budget):
    """Pick the fused-weight column-tile width (multiple of 128).

    Returns (tn, weight_buffer_count): 1 -> whole fused weight VMEM-resident,
    single-buffered; 2 -> [W1_j | W2_j] column tiles streamed, double-buffered.
    """
    np128 = _round_up(out_dim, _LANE)
    # Prefer full-width resident weight if a tm >= 256 row tile still fits.
    if (_weight_bytes(kp, np128, w_bytes, 1)
            + 256 * _per_row_bytes(kp, np128, x_bytes, out_bytes)) <= budget:
        return np128, 1

    # Stream column tiles: largest tn (multiple of 128) leaving room for tm=256.
    denom = 2 * (2 * kp * w_bytes + 8) + 256 * (2 * out_bytes + 24)
    numer = budget - 256 * 2 * kp * x_bytes
    if numer <= 0:
        return _LANE, 2
    tn = min(np128, numer // denom) // _LANE * _LANE
    tn = max(_LANE, tn)
    # Rebalance so the column tiles cover np128 with minimal padding.
    num_n = -(-np128 // tn)
    tn = _round_up(-(-np128 // num_n), _LANE)
    return int(tn), 2


def _choose_tm(m, kp, tn, x_bytes, w_bytes, out_bytes, budget, w_bufs):
    resident = _weight_bytes(kp, tn, w_bytes, w_bufs)
    per_row = _per_row_bytes(kp, tn, x_bytes, out_bytes)
    avail = max(budget - resident, per_row * _SUBLANE)
    tm = int(min(512, max(_SUBLANE, avail // per_row)))
    # MXU-friendly rounding (v6e/v7x MXU 2x256^2; v5e 4x128^2).
    if tm >= 256:
        tm = tm // 256 * 256
    elif tm >= 128:
        tm = 128
    else:
        tm = tm // _SUBLANE * _SUBLANE
    # Guarantee >= 2 row tiles for large M so both v7x TensorCores get work.
    if m > 256:
        tm = min(tm, _round_up(-(-m // 2), 256))
    tm = min(tm, _round_up(m, _SUBLANE))
    return max(_SUBLANE, tm)


class GLUParams(NamedTuple):
    w_cat: jax.Array   # (Kp, 2*Np)  compute_dtype, interleaved [W1_j | W2_j]
    b_cat: jax.Array   # (1, 2*Np)   float32, interleaved [b1_j | b2_j]
    in_dim: int
    out_dim: int
    tn: int            # column-tile width (multiple of 128)
    weight_buffers: int  # 1 = VMEM-resident single-buffer, 2 = streamed


def prepare_glu_params(w1, b1, w2, b2, *, x_dtype=jnp.float32,
                       compute_dtype=jnp.bfloat16):
    """One-time parameter preprocessing (hoist out of the per-call hot path).

    w1/w2: (in_dim, out_dim) = transpose of nn.Linear.weight; b1/b2: (out_dim,).
    """
    in_dim, out_dim = w1.shape
    kp = _round_up(in_dim, _LANE)
    x_bytes = jnp.dtype(x_dtype).itemsize
    w_bytes = jnp.dtype(compute_dtype).itemsize
    out_bytes = x_bytes
    budget, _ = _vmem_budget()

    tn, w_bufs = _choose_tn(kp, out_dim, x_bytes, w_bytes, out_bytes, budget)
    np_pad = _round_up(out_dim, tn)
    num_n = np_pad // tn

    def pad2d(a):
        return jnp.pad(a, ((0, kp - a.shape[0]), (0, np_pad - a.shape[1])))

    w1p = pad2d(w1).astype(compute_dtype)
    w2p = pad2d(w2).astype(compute_dtype)
    # (Kp, num_n, 2, tn) -> (Kp, 2*Np): per column tile j, [W1_j | W2_j].
    w_cat = jnp.stack(
        [w1p.reshape(kp, num_n, tn), w2p.reshape(kp, num_n, tn)], axis=2
    ).reshape(kp, 2 * np_pad)

    b1p = jnp.pad(b1, (0, np_pad - out_dim)).astype(jnp.float32)
    b2p = jnp.pad(b2, (0, np_pad - out_dim)).astype(jnp.float32)
    b_cat = jnp.stack(
        [b1p.reshape(num_n, tn), b2p.reshape(num_n, tn)], axis=1
    ).reshape(1, 2 * np_pad)

    return GLUParams(w_cat=w_cat, b_cat=b_cat, in_dim=in_dim, out_dim=out_dim,
                     tn=int(tn), weight_buffers=int(w_bufs))


def _glu_kernel(x_ref, w_ref, b_ref, o_ref):
    # x: (tm, Kp), w: (Kp, 2*tn) = [W1_j | W2_j], b: (1, 2*tn), o: (tm, tn)
    tn = o_ref.shape[-1]
    x = x_ref[...].astype(w_ref.dtype)          # bf16 at the MXU inputs

    # One fused MXU pass for both projections, f32 accumulation, f32 bias add.
    h = jnp.dot(x, w_ref[...], preferred_element_type=jnp.float32) + b_ref[...]

    h1 = h[:, :tn]   # gate branch (lane-aligned split, no layout shuffle)
    h2 = h[:, tn:]   # value branch

    # Exact GELU: 0.5 * x * (1 + erf(x / sqrt(2))) == F.gelu default.
    g = 0.5 * h1 * (1.0 + lax.erf(h1 * _INV_SQRT2))

    o_ref[...] = (g * h2).astype(o_ref.dtype)


def glu_apply(x, params: GLUParams):
    """x: (..., in_dim) -> (..., out_dim) using prepared fused params."""
    in_dim, out_dim, tn = params.in_dim, params.out_dim, params.tn
    kp, two_np = params.w_cat.shape
    np_pad = two_np // 2
    num_n = np_pad // tn

    lead_shape = x.shape[:-1]
    m = int(math.prod(lead_shape)) if lead_shape else 1
    x2d = x.reshape(m, in_dim)
    if in_dim != kp:  # zero-pad K so every lane tile / MXU K pass is full
        x2d = jnp.pad(x2d, ((0, 0), (0, kp - in_dim)))

    x_bytes = x2d.dtype.itemsize
    w_bytes = params.w_cat.dtype.itemsize
    out_bytes = jnp.dtype(x.dtype).itemsize
    budget, cap = _vmem_budget()

    tm = _choose_tm(m, kp, tn, x_bytes, w_bytes, out_bytes, budget,
                    params.weight_buffers)
    num_m = int(pl.cdiv(m, tm))   # ragged last row tile handled by the pipeline

    # VMEM limit tracks actual need, clamped only to physical capacity.
    need = (_weight_bytes(kp, tn, w_bytes, params.weight_buffers)
            + tm * _per_row_bytes(kp, tn, x_bytes, out_bytes) + (4 << 20))
    vmem_limit = int(min(max(need, 32 << 20), cap))

    if params.weight_buffers == 1:
        # Constant index_map -> resident weight; single-buffer halves footprint.
        w_spec = pl.BlockSpec((kp, 2 * tn), lambda j, i: (0, j),
                              pipeline_mode=pl.Buffered(1))
        b_spec = pl.BlockSpec((1, 2 * tn), lambda j, i: (0, j),
                              pipeline_mode=pl.Buffered(1))
    else:
        # Streamed column tiles: default double-buffering.
        w_spec = pl.BlockSpec((kp, 2 * tn), lambda j, i: (0, j))
        b_spec = pl.BlockSpec((1, 2 * tn), lambda j, i: (0, j))

    out = pl.pallas_call(
        _glu_kernel,
        out_shape=jax.ShapeDtypeStruct((m, np_pad), x.dtype),
        grid_spec=pltpu.PrefetchScalarGridSpec(
            num_scalar_prefetch=0,
            grid=(num_n, num_m),          # N tiles outer (weight read once)
            in_specs=[
                pl.BlockSpec((tm, kp), lambda j, i: (i, 0)),   # x row tiles
                w_spec,                                        # fused weights
                b_spec,                                        # fused bias
            ],
            out_specs=pl.BlockSpec((tm, tn), lambda j, i: (i, j)),
        ),
        compiler_params=pltpu.CompilerParams(
            dimension_semantics=("parallel", "parallel"),
            vmem_limit_bytes=vmem_limit,
        ),
    )(x2d, params.w_cat, params.b_cat)

    if np_pad != out_dim:
        out = out[:, :out_dim]
    return out.reshape(*lead_shape, out_dim)


def glu_pallas(x, w1, b1, w2, b2):
    """Convenience wrapper. For repeated calls, hoist prepare_glu_params()."""
    params = prepare_glu_params(w1, b1, w2, b2, x_dtype=x.dtype)
    return glu_apply(x, params)


def _reference(x, w1, b1, w2, b2):
    h1 = x @ w1 + b1
    h2 = x @ w2 + b2
    return jax.nn.gelu(h1, approximate=False) * h2


if __name__ == "__main__":
    batch, seq, in_dim, out_dim = 2, 8, 32, 32

    key = jax.random.PRNGKey(0)
    kx, kw1, kb1, kw2, kb2 = jax.random.split(key, 5)

    bound = 1.0 / math.sqrt(in_dim)
    x = jax.random.normal(kx, (batch, seq, in_dim), dtype=jnp.float32)
    w1 = jax.random.uniform(kw1, (in_dim, out_dim), minval=-bound, maxval=bound,
                            dtype=jnp.float32)
    b1 = jax.random.uniform(kb1, (out_dim,), minval=-bound, maxval=bound,
                            dtype=jnp.float32)
    w2 = jax.random.uniform(kw2, (in_dim, out_dim), minval=-bound, maxval=bound,
                            dtype=jnp.float32)
    b2 = jax.random.uniform(kb2, (out_dim,), minval=-bound, maxval=bound,
                            dtype=jnp.float32)

    # One-time parameter preprocessing (hoisted out of the per-call path).
    params = prepare_glu_params(w1, b1, w2, b2, x_dtype=x.dtype)

    out = glu_apply(x, params)
    jax.block_until_ready(out)

    ref = _reference(x, w1, b1, w2, b2)
    assert out.shape == (batch, seq, out_dim)
    # bf16 MXU inputs with f32 accumulation -> loosened tolerance vs f32 ref.
    assert jnp.allclose(out, ref, atol=2e-2, rtol=2e-2), "mismatch vs reference"

    print("KERNEL_OK")
</pallas_src>

<mosaic_0001>
module attributes {stable_mosaic.version = 11 : i64} {
  func.func @_glu_kernel(%arg0: i32, %arg1: i32, %arg2: memref<16x128xf32, #tpu.memory_space<vmem>>, %arg3: memref<128x256xbf16, #tpu.memory_space<vmem>>, %arg4: memref<1x256xf32, #tpu.memory_space<vmem>>, %arg5: memref<16x128xf32, #tpu.memory_space<vmem>>) attributes {dimension_semantics = [#tpu.dimension_semantics<parallel>, #tpu.dimension_semantics<parallel>], iteration_bounds = array<i64: 1, 1>, scalar_prefetch = 0 : i64, scratch_operands = 0 : i64, tpu.core_type = #tpu.core_type<tc>, window_params = [{transform_indices = @transform_0, window_bounds = array<i64: 16, 128>}, {pipeline_mode = #tpu.pipeline_mode<synchronous>, transform_indices = @transform_1, window_bounds = array<i64: 128, 256>}, {pipeline_mode = #tpu.pipeline_mode<synchronous>, transform_indices = @transform_2, window_bounds = array<i64: 1, 256>}, {transform_indices = @transform_3, window_bounds = array<i64: 16, 128>}]} {
    %c0 = arith.constant 0 : index
    %c0_0 = arith.constant 0 : index
    %0 = vector.load %arg2[%c0, %c0_0] : memref<16x128xf32, #tpu.memory_space<vmem>>, vector<16x128xf32>
    %1 = arith.truncf %0 : vector<16x128xf32> to vector<16x128xbf16>
    %c0_1 = arith.constant 0 : index
    %c0_2 = arith.constant 0 : index
    %2 = vector.load %arg3[%c0_1, %c0_2] : memref<128x256xbf16, #tpu.memory_space<vmem>>, vector<128x256xbf16>
    %cst = arith.constant dense<0.000000e+00> : vector<16x256xf32>
    %3 = tpu.matmul %1, %2, %cst {dimension_numbers = #tpu.dot_dimension_numbers<[1], [0], [0], [1], [0, 0, 1, 1], [], []>} : vector<16x128xbf16>, vector<128x256xbf16>, vector<16x256xf32> -> vector<16x256xf32>
    %c0_3 = arith.constant 0 : index
    %c0_4 = arith.constant 0 : index
    %4 = vector.load %arg4[%c0_3, %c0_4] : memref<1x256xf32, #tpu.memory_space<vmem>>, vector<1x256xf32>
    %5 = vector.broadcast %4 : vector<1x256xf32> to vector<16x256xf32>
    %6 = arith.addf %3, %5 : vector<16x256xf32>
    %7 = vector.extract_strided_slice %6 {offsets = [0, 0], sizes = [16, 128], strides = [1, 1]} : vector<16x256xf32> to vector<16x128xf32>
    %8 = vector.extract_strided_slice %6 {offsets = [0, 128], sizes = [16, 128], strides = [1, 1]} : vector<16x256xf32> to vector<16x128xf32>
    %cst_5 = arith.constant 5.000000e-01 : f32
    %9 = vector.broadcast %cst_5 : f32 to vector<16x128xf32>
    %10 = arith.mulf %9, %7 : vector<16x128xf32>
    %cst_6 = arith.constant 0.707106769 : f32
    %11 = vector.broadcast %cst_6 : f32 to vector<16x128xf32>
    %12 = arith.mulf %7, %11 : vector<16x128xf32>
    %13 = math.erf %12 : vector<16x128xf32>
    %cst_7 = arith.constant 1.000000e+00 : f32
    %14 = vector.broadcast %cst_7 : f32 to vector<16x128xf32>
    %15 = arith.addf %14, %13 : vector<16x128xf32>
    %16 = arith.mulf %10, %15 : vector<16x128xf32>
    %17 = arith.mulf %16, %8 : vector<16x128xf32>
    %c0_8 = arith.constant 0 : index
    %c0_9 = arith.constant 0 : index
    %18 = vector.load %arg5[%c0_8, %c0_9] : memref<16x128xf32, #tpu.memory_space<vmem>>, vector<16x128xf32>
    tpu.vector_store %arg5[%c0_8, %c0_9], %17 {strides = array<i32>} : memref<16x128xf32, #tpu.memory_space<vmem>>, vector<16x128xf32>,
    return
  }
  func.func @transform_0(%arg0: i32, %arg1: i32) -> (i32, i32) {
    %c0_i32 = arith.constant 0 : i32
    %c0_i32_0 = arith.constant 0 : i32
    return %arg1, %c0_i32 : i32, i32
  }
  func.func @transform_1(%arg0: i32, %arg1: i32) -> (i32, i32) {
    %c0_i32 = arith.constant 0 : i32
    %c0_i32_0 = arith.constant 0 : i32
    return %c0_i32, %arg0 : i32, i32
  }
  func.func @transform_2(%arg0: i32, %arg1: i32) -> (i32, i32) {
    %c0_i32 = arith.constant 0 : i32
    %c0_i32_0 = arith.constant 0 : i32
    return %c0_i32, %arg0 : i32, i32
  }
  func.func @transform_3(%arg0: i32, %arg1: i32) -> (i32, i32) {
    %c0_i32 = arith.constant 0 : i32
    return %arg1, %arg0 : i32, i32
  }
}

</mosaic_0001>

<bundles_post_ra>
// kernel: tpu_custom_call.1
= control target key start
LH: loop header
LB: loop body
LE: loop exit
PB: predicated region body
PF: predicated region fallthrough
CT: control target
= control target key end

     0   :  { %8 = vsyncpa [#allocation3], 0  ;;  %s563_s0 = inlined_call_operand.hbm [shape: f32[16,128], index: 0, kind: input, shape index: {}]   ;;  %s564_s1 = inlined_call_operand.hbm [shape: bf16[128,256], index: 1, kind: input, shape index: {}]   ;;  %s565_s2 = inlined_call_operand.hbm [shape: f32[1,256], index: 2, kind: input, shape index: {}]   ;;  %s566_s3 = inlined_call_operand.hbm [shape: f32[16,128], index: 3, kind: output, shape index: {}]  }
   0x1   :  { %9 = vsyncpa [#allocation6], 0 }
   0x2   :  { %10 = vsyncpa [#allocation4], 0  ;;  %s28_s14 = sshll.u32 %s564_s1, 4  ;;  %s499_s15 = smov [#allocation5]   ;;  %s29_s14 = int_to_ptr.hbm [resolvable:$true] %s28_s14 }
   0x3   :  { %s30_s16 = sshll.u32 %s499_s15, 4  ;;  %s15_s19 = sshll.u32 %s563_s0, 4  ;;  %s31_s16 = int_to_ptr.vmem [resolvable:$true] %s30_s16  ;;  %s16_s19 = int_to_ptr.hbm [resolvable:$true] %s15_s19 }
   0x4   :  { %s500_s20 = smov 128   ;;  %s501_s21 = smov 8  }
   0x5   :  { %36 = dma.hbm_to_vmem [thread:$0]  %s29_s14, 2048, %s31_s16, [#allocation6], %s500_s20, %s500_s20, %s501_s21  }
   0x6   :  { %s502_s22 = smov [#allocation2]   ;;  %s42_s1 = sshll.u32 %s565_s2, 4  ;;  %s43_s1 = int_to_ptr.hbm [resolvable:$true] %s42_s1 }
   0x7   :  { %s17_s23 = sshll.u32 %s502_s22, 4  ;;  %s503_s0 = smov [#allocation7]   ;;  %s18_s23 = int_to_ptr.vmem [resolvable:$true] %s17_s23 }
   0x8   :  { %23 = dma.hbm_to_vmem [thread:$0]  %s16_s19, 256, %s18_s23, [#allocation3], %s500_s20, %s500_s20, %s501_s21  }
   0x9   :  { %s44_s26 = sshll.u32 %s503_s0, 4  ;;  %s45_s26 = int_to_ptr.vmem [resolvable:$true] %s44_s26 }
   0xa   :  { %47 = dma.hbm_to_vmem [thread:$0]  %s43_s1, 32, %s45_s26, [#allocation6]  }
   0xb   :  { %493 = dma.done.wait [#allocation3], 256  }
   0xc   :  { %494 = vsyncadd [#allocation3], 4294967040 }
   0xd   :  { %495 = dma.done.wait [#allocation6], 2080  }
   0xe   :  { %496 = vsyncadd [#allocation6], 4294965216  ;;  %v363_v0 = vld [vmem:[#allocation5 + $0x70] sm:$0xf]  ;;  %v386_v1 = vld [vmem:[#allocation5 + $0x74] sm:$0xf0] }
   0xf   :  { %v355_v2 = vld [vmem:[#allocation5 + $0x60] sm:$0xf]  ;;  %v364_v3 = vor.u32 %v386_v1, %v363_v0  ;;  %v384_v4 = vld [vmem:[#allocation5 + $0x64] sm:$0xf0]  ;;  %v347_v6 = vld [vmem:[#allocation5 + $0x50] sm:$0xf] }
  0x10   :  { %v356_v5 = vor.u32 %v384_v4, %v355_v2  ;;  %v382_v7 = vld [vmem:[#allocation5 + $0x54] sm:$0xf0]  ;;  %v385_v8 = vld [vmem:[#allocation5 + $0x74] sm:$0xf]  ;;  %v365_v9 = vld [vmem:[#allocation5 + $0x78] sm:$0xf0] }
  0x11   :  { %165 = vmatpush.bf16.msra.mxu0 %v364_v3  ;;  %v383_v10 = vld [vmem:[#allocation5 + $0x64] sm:$0xf]  ;;  %v348_v11 = vor.u32 %v382_v7, %v347_v6  ;;  %v368_v12 = vor.u32 %v385_v8, %v365_v9  ;;  %v357_v13 = vld [vmem:[#allocation5 + $0x68] sm:$0xf0]  ;;  %v339_v14 = vld [vmem:[#allocation5 + $0x40] sm:$0xf] }
  0x12   :  { %v380_v15 = vld [vmem:[#allocation5 + $0x44] sm:$0xf0]  ;;  %v360_v16 = vor.u32 %v383_v10, %v357_v13  ;;  %v381_v17 = vld [vmem:[#allocation5 + $0x54] sm:$0xf]  ;;  %v349_v18 = vld [vmem:[#allocation5 + $0x58] sm:$0xf0] }
  0x13   :  { %179 = vmatpush.bf16.msra.mxu1 %v368_v12  ;;  %v340_v19 = vor.u32 %v380_v15, %v339_v14  ;;  %v331_v20 = vld [vmem:[#allocation5 + $0x30] sm:$0xf]  ;;  %v378_v21 = vld [vmem:[#allocation5 + $0x34] sm:$0xf0]  ;;  %v352_v22 = vor.u32 %v381_v17, %v349_v18  ;;  %v379_v23 = vld [vmem:[#allocation5 + $0x44] sm:$0xf] }
  0x14   :  { %v341_v24 = vld [vmem:[#allocation5 + $0x48] sm:$0xf0]  ;;  %v332_v25 = vor.u32 %v378_v21, %v331_v20  ;;  %v323_v26 = vld [vmem:[#allocation5 + $0x20] sm:$0xf]  ;;  %v376_v27 = vld [vmem:[#allocation5 + $0x24] sm:$0xf0] }
  0x15   :  { %166 = vmatpush.bf16.msra.mxu0 %v356_v5  ;;  %v344_v28 = vor.u32 %v379_v23, %v341_v24  ;;  %v377_v29 = vld [vmem:[#allocation5 + $0x34] sm:$0xf]  ;;  %v333_v30 = vld [vmem:[#allocation5 + $0x38] sm:$0xf0]  ;;  %v324_v31 = vor.u32 %v376_v27, %v323_v26  ;;  %v315_v32 = vld [vmem:[#allocation5 + $0x10] sm:$0xf] }
  0x16   :  { %v374_v33 = vld [vmem:[#allocation5 + $0x14] sm:$0xf0]  ;;  %v336_v34 = vor.u32 %v377_v29, %v333_v30  ;;  %v375_v35 = vld [vmem:[#allocation5 + $0x24] sm:$0xf]  ;;  %v325_v36 = vld [vmem:[#allocation5 + $0x28] sm:$0xf0] }
  0x17   :  { %180 = vmatpush.bf16.msra.mxu1 %v360_v16  ;;  %v316_v37 = vor.u32 %v374_v33, %v315_v32  ;;  %v307_v38 = vld [vmem:[#allocation5] sm:$0xf]  ;;  %v372_v39 = vld [vmem:[#allocation5 + $0x4] sm:$0xf0]  ;;  %v328_v40 = vor.u32 %v375_v35, %v325_v36  ;;  %v373_v41 = vld [vmem:[#allocation5 + $0x14] sm:$0xf] }
  0x18   :  { %v317_v42 = vld [vmem:[#allocation5 + $0x18] sm:$0xf0]  ;;  %v308_v43 = vor.u32 %v372_v39, %v307_v38  ;;  %v60_v44 = vld [vmem:[#allocation2] sm:$0xff]  ;;  %v371_v48 = vld [vmem:[#allocation5 + $0x4] sm:$0xf]  ;;  %s504_s2 = smov [#allocation8]  }
  0x19   :  { %167 = vmatpush.bf16.msra.mxu0 %v348_v11  ;;  %v61_v45 = vld [vmem:[#allocation2 + $0x8] sm:$0xff]  ;;  %v320_v46 = vor.u32 %v373_v41, %v317_v42  ;;  %v309_v49 = vld [vmem:[#allocation5 + $0x8] sm:$0xf0]  ;;  %v540_v51 = vld [vmem:[#allocation7] sm:$0x3]  ;;  %s289_s27 = sshll.u32 %s504_s2, 4  ;;  %s290_s27 = int_to_ptr.vmem [resolvable:$true] %s289_s27 }
  0x1a   :  { %v62_v47 = vpack.c.bf16 %v61_v45, %v60_v44  ;;  %v312_v50 = vor.u32 %v371_v48, %v309_v49  ;;  %v81_v52 = vperm.slane %v540_v51, 0  ;;  %s291_s30 = sshll.u32 %s566_s3, 4  ;;  %s292_s30 = int_to_ptr.hbm [resolvable:$true] %s291_s30 }
  0x1b   :  { %181 = vmatpush.bf16.msra.mxu1 %v352_v22 }
  0x1d   :  { %168 = vmatpush.bf16.msra.mxu0 %v340_v19 }
  0x1f   :  { %182 = vmatpush.bf16.msra.mxu1 %v344_v28 }
  0x21   :  { %169 = vmatpush.bf16.msra.mxu0 %v332_v25 }
  0x23   :  { %183 = vmatpush.bf16.msra.mxu1 %v336_v34 }
  0x25   :  { %170 = vmatpush.bf16.msra.mxu0 %v324_v31 }
  0x27   :  { %184 = vmatpush.bf16.msra.mxu1 %v328_v40 }
  0x29   :  { %171 = vmatpush.bf16.msra.mxu0 %v316_v37 }
  0x2b   :  { %185 = vmatpush.bf16.msra.mxu1 %v320_v46 }
  0x2d   :  { %172 = vmatpush.bf16.msra.mxu0 %v308_v43 }
  0x2f   :  { %186 = vmatpush.bf16.msra.mxu1 %v312_v50 }
  0x30   :  { %173 = vmatmul.bf16.vlgmr.msra.gmra.mxu0 %v62_v47 }
  0x32   :  { %187 = vmatmul.bf16.vlgmr.msra.gmra.mxu1 %v62_v47 }
  0xad   :  { %v174_v53 = vpop.f32.mrf.mxu0 }
  0xae   :  { %v543_v54 = vadd.f32 %v174_v53, %v81_v52  ;;  %v82_v53 = vperm.slane %v540_v51, 1 }
  0xb0   :  { %v195_v55 = vmul.f32 0.70710677, %v543_v54 }
  0xb2   :  { %v197_v56 = vmul.f32 %v195_v55, %v195_v55 }
  0xb4   :  { %v198_v57 = vmin.f32 %v197_v56, 16.0 }
  0xb5   :  { %v176_v58 = vpop.f32.mrf.mxu0 }
  0xb6   :  { %v199_v59 = vmul.f32 2.1237322e-06, %v198_v57  ;;  %v210_v60 = vmul.f32 3.8918573e-05, %v198_v57  ;;  %v546_v61 = vadd.f32 %v176_v58, %v81_v52  ;;  %v188_v58 = vpop.f32.mrf.mxu1 }
  0xb8   :  { %v200_v62 = vadd.f32 0.00028619796, %v199_v59  ;;  %v211_v63 = vadd.f32 0.001143296, %v210_v60  ;;  %v549_v0 = vmul.f32 0.70710677, %v546_v61 }
  0xba   :  { %v201_v1 = vmul.f32 %v200_v62, %v198_v57  ;;  %v212_v2 = vmul.f32 %v211_v63, %v198_v57  ;;  %v237_v3 = vmul.f32 %v549_v0, %v549_v0 }
  0xbc   :  { %v213_v4 = vadd.f32 0.014752088, %v212_v2  ;;  %v202_v5 = vadd.f32 0.0036580483, %v201_v1  ;;  %v238_v6 = vmin.f32 %v237_v3, 16.0  ;;  %v193_v1 = vmul.f32 0.5, %v543_v54 }
  0xbd   :  { %v189_v2 = vadd.f32 %v188_v58, %v82_v53 }
  0xbe   :  { %v214_v7 = vmul.f32 %v213_v4, %v198_v57  ;;  %v239_v8 = vmul.f32 2.1237322e-06, %v238_v6  ;;  %v250_v9 = vmul.f32 3.8918573e-05, %v238_v6  ;;  %v203_v11 = vmul.f32 %v202_v5, %v198_v57 }
  0xc0   :  { %v215_v10 = vadd.f32 0.112945676, %v214_v7  ;;  %v240_v12 = vadd.f32 0.00028619796, %v239_v8  ;;  %v251_v13 = vadd.f32 0.001143296, %v250_v9 }
  0xc1   :  { %v204_v18 = vadd.f32 0.05243302, %v203_v11  ;;  %v190_v11 = vpop.f32.mrf.mxu1 }
  0xc2   :  { %v216_v14 = vmul.f32 %v215_v10, %v198_v57  ;;  %v241_v15 = vmul.f32 %v240_v12, %v238_v6  ;;  %v252_v16 = vmul.f32 %v251_v13, %v238_v6  ;;  %v194_v12 = vmul.f32 0.5, %v546_v61 }
  0xc3   :  { %v205_v24 = vmul.f32 %v204_v18, %v198_v57  ;;  %v191_v13 = vadd.f32 %v190_v11, %v82_v53 }
  0xc4   :  { %v217_v17 = vadd.f32 0.4994258, %v216_v14  ;;  %v253_v19 = vadd.f32 0.014752088, %v252_v16  ;;  %v242_v21 = vadd.f32 0.0036580483, %v241_v15 }
  0xc5   :  { %v206_v28 = vadd.f32 0.18741608, %v205_v24 }
  0xc6   :  { %v218_v20 = vmul.f32 %v217_v17, %v198_v57  ;;  %v254_v22 = vmul.f32 %v253_v19, %v238_v6  ;;  %v243_v26 = vmul.f32 %v242_v21, %v238_v6 }
  0xc7   :  { %v207_v33 = vmul.f32 %v206_v28, %v198_v57 }
  0xc8   :  { %v219_v23 = vadd.f32 1.0, %v218_v20  ;;  %v255_v25 = vadd.f32 0.112945676, %v254_v22  ;;  %v244_v30 = vadd.f32 0.05243302, %v243_v26 }
  0xc9   :  { %v208_v39 = vadd.f32 1.1283791, %v207_v33 }
  0xca   :  { %393 = vrcp.f32 %v219_v23  ;;  %v256_v27 = vmul.f32 %v255_v25, %v238_v6  ;;  %v245_v36 = vmul.f32 %v244_v30, %v238_v6  ;;  %v231_v38 = vand.u32 2147483648, %v219_v23 }
  0xcb   :  { %v229_v41 = vand.u32 2147483647, %v219_v23  ;;  %vm225_vm1 = vweird.f32 %v219_v23  ;;  %v209_v46 = vmul.f32 %v208_v39, %v195_v55 }
  0xcc   :  { %v257_v29 = vadd.f32 0.4994258, %v256_v27  ;;  %v246_v42 = vadd.f32 0.18741608, %v245_v36  ;;  %v232_v44 = vor.u32 1.1754944e-38, %v231_v38 }
  0xcd   :  { %vm230_vm3 = vcmp.eq.f32.partialorder %v229_v41, 8.507059e+37 }
  0xce   :  { %v258_v31 = vmul.f32 %v257_v29, %v238_v6  ;;  %v247_v49 = vmul.f32 %v246_v42, %v238_v6 }
  0xd0   :  { %v394_v32 = vpop.eup %393  ;;  %v259_v35 = vadd.f32 1.0, %v258_v31  ;;  %v248_v60 = vadd.f32 1.1283791, %v247_v49 }
  0xd1   :  { %v221_v34 = vmul.f32 %v394_v32, %v219_v23  ;;  %vm226_vm0 = vweird.f32 %v394_v32 }
  0xd2   :  { %395 = vrcp.f32 %v259_v35  ;;  %vm227_vm2 = vmor %vm225_vm1, %vm226_vm0  ;;  %v271_v57 = vand.u32 2147483648, %v259_v35  ;;  %v269_v63 = vand.u32 2147483647, %v259_v35  ;;  %vm265_vm5 = vweird.f32 %v259_v35 }
  0xd3   :  { %v222_v37 = vsub.f32 1.0, %v221_v34  ;;  %v249_v6 = vmul.f32 %v248_v60, %v549_v0 }
  0xd4   :  { %v272_v4 = vor.u32 1.1754944e-38, %v271_v57  ;;  %vm270_vm7 = vcmp.eq.f32.partialorder %v269_v63, 8.507059e+37 }
  0xd5   :  { %v223_v40 = vmul.f32 %v394_v32, %v222_v37 }
  0xd7   :  { %v224_v43 = vadd.f32 %v394_v32, %v223_v40 }
  0xd8   :  { %v396_v45 = vpop.eup %395 }
  0xd9   :  { %v228_v47 = vsel %vm227_vm2, %v394_v32, %v224_v43  ;;  %v261_v50 = vmul.f32 %v396_v45, %v259_v35  ;;  %vm266_vm4 = vweird.f32 %v396_v45 }
  0xda   :  { %v233_v48 = vsel %vm230_vm3, %v232_v44, %v228_v47  ;;  %vm267_vm6 = vmor %vm265_vm5, %vm266_vm4 }
  0xdb   :  { %v234_v52 = vmul.f32 %v233_v48, %v209_v46  ;;  %v262_v56 = vsub.f32 1.0, %v261_v50 }
  0xdd   :  { %v369_v59 = vclamps-f32 %v234_v52, 1.0  ;;  %v263_v62 = vmul.f32 %v396_v45, %v262_v56 }
  0xdf   :  { %v277_v55 = vadd.f32 1.0, %v369_v59  ;;  %v264_v3 = vadd.f32 %v396_v45, %v263_v62 }
  0xe1   :  { %v279_v5 = vmul.f32 %v277_v55, %v193_v1  ;;  %v268_v51 = vsel %vm267_vm6, %v396_v45, %v264_v3 }
  0xe2   :  { %v273_v7 = vsel %vm270_vm7, %v272_v4, %v268_v51 }
  0xe3   :  { %v281_v8 = vmul.f32 %v279_v5, %v189_v2  ;;  %v274_v9 = vmul.f32 %v273_v7, %v249_v6 }
  0xe5   :  { %283 = vst [vmem:[#allocation8] sm:$0xff] %v281_v8  ;;  %v370_v10 = vclamps-f32 %v274_v9, 1.0 }
  0xe7   :  { %v278_v54 = vadd.f32 1.0, %v370_v10 }
  0xe9   :  { %v280_v14 = vmul.f32 %v278_v54, %v194_v12 }
  0xeb   :  { %v282_v0 = vmul.f32 %v280_v14, %v191_v13 }
  0xed   :  { %284 = vst [vmem:[#allocation8 + $0x8] sm:$0xff] %v282_v0 }
  0xee   :  { %297 = dma.vmem_to_hbm [thread:$0]  %s290_s27, 256, %s292_s30, [#allocation4], %s500_s20, %s500_s20, %s501_s21  }
  0xef   :  { %497 = dma.done.wait [#allocation4], 256  }
  0xf0   :  { %498 = vsyncadd [#allocation4], 4294967040 }
  0xf1   :  { %302 = vsyncpa [#allocation3], 1 }
  0xf2   :  { %303 = vsyncpa [#allocation6], 1 }
  0xf3   :  { %304 = vsyncpa [#allocation4], 1 }

</bundles_post_ra>
